<compile_context>
chip_gen: v7x
topology: tpu7x:2x2x1
jax: 0.10.0
libtpu: 0.0.40
codegen_flags: <defaults>
</compile_context>

<pallas_src>
import numpy as np
import jax
import jax.numpy as jnp
from jax import lax
from jax.experimental import pallas as pl
from jax.experimental.pallas import tpu as pltpu


class GridEmbeddingPallas:
    """Pallas port of nsvf/model.py::GridEmbedding (forward only)."""

    def __init__(self, grid_size, embedding_dim, bounding_box, key, block_n_max=512):
        self.grid_size = tuple(int(g) for g in grid_size)
        gx, gy, gz = self.grid_size
        self.num_embedding = gx * gy * gz
        self.embedding_dim = int(embedding_dim)
        # Default 512; on v6e with large N this can be swept up to 1024-2048
        # (one-hot tile at E=64 is ~0.5 MiB at TN=2048); re-check VMEM on v7x.
        self.block_n_max = int(block_n_max)

        box_min = np.asarray(bounding_box[0], np.float32)
        box_max = np.asarray(bounding_box[1], np.float32)
        self.box_min = box_min
        self.scale_factor = np.asarray(self.grid_size, np.float32) / (box_max - box_min)

        # nn.Embedding(num_embedding, embedding_dim) -> N(0, 1) init.
        # grid_to_embedding_map is torch.range(0, E-1) == identity, so the
        # lookup is a direct index into the table.
        self.table = jax.random.normal(
            key, (self.num_embedding, self.embedding_dim), jnp.float32
        )
        # Kernel consumes the table transposed to [D, E] so the single matmul
        # produces a [D, TN] lane-dense output tile.
        self.table_t = jnp.transpose(self.table)

    # ------------------------------------------------------------------ #
    # Tiling / VMEM-budget helpers
    # ------------------------------------------------------------------ #
    def _pick_block_n(self, n_points):
        # With dimension_semantics=("parallel",) the grid is sharded across
        # TensorCores (2 on v7x); keep >= ~8 total steps (>= 3-4 per core) so
        # input/output DMAs overlap compute, while tiles stay a multiple of
        # 128 lanes.
        tn = self.block_n_max
        while tn > 128 and -(-n_points // tn) < 8:
            tn //= 2
        return max(tn, 128)

    @staticmethod
    def _pad_tile_bytes(rows, cols, itemsize=4):
        # (8, 128) sublane/lane padding of an f32 tile.
        return (-(-rows // 8) * 8) * (-(-cols // 128) * 128) * itemsize

    def _vmem_limit(self, tn):
        D, E = self.embedding_dim, self.num_embedding
        pipelined = 2 * (
            self._pad_tile_bytes(3, tn)     # x tile (double-buffered)
            + self._pad_tile_bytes(D, E)    # table (constant index_map; 2x alloc)
            + self._pad_tile_bytes(D, tn)   # output tile
        )
        live = self._pad_tile_bytes(E, tn)  # [E, TN] weighted one-hot intermediate
        # Generous headroom for compiler-internal scratch; stays well under the
        # v5e 16 MiB scoped default and the v7x 32 MiB scoped / 64 MiB physical.
        return int(min(max(4 * (pipelined + live), 8 << 20), 32 << 20))

    # ------------------------------------------------------------------ #
    # Kernel
    # ------------------------------------------------------------------ #
    def _make_kernel(self):
        gx, gy, _ = self.grid_size
        E = self.num_embedding
        # Bake the affine transform in as Python scalars (no captured arrays).
        bm0, bm1, bm2 = (float(v) for v in self.box_min)
        sc0, sc1, sc2 = (float(v) for v in self.scale_factor)
        # Compile-time flat-index offsets of the 7 non-base corners, matching
        # the reference: c001=+1, c010=+gx, c011=+gx+1, c100=+gx*gy, ...
        offs = (1, gx, gx + 1, gx * gy, gx * gy + 1, gx * gy + gx, gx * gy + gx + 1)

        def kernel(xt_ref, tab_ref, o_ref):
            tn = xt_ref.shape[1]
            # Lane-dense [1, TN] per-point prologue.
            x0 = (xt_ref[0:1, :] - bm0) * sc0
            x1 = (xt_ref[1:2, :] - bm1) * sc1
            x2 = (xt_ref[2:3, :] - bm2) * sc2
            i0 = jnp.floor(x0)
            i1 = jnp.floor(x1)
            i2 = jnp.floor(x2)
            w0 = x0 - i0
            w1 = x1 - i1
            w2 = x2 - i2
            om0 = 1.0 - w0
            om1 = 1.0 - w1
            om2 = 1.0 - w2

            c000 = (i0 + i1 * gx + i2 * (gx * gy)).astype(jnp.int32)   # [1, TN]
            base = jnp.where(c000 >= E, E - 1, c000)                   # clamped c000

            # Corner weights (expansion of the reference lerp chain), ordered
            # to match `offs`.  NOTE: the reference pairs w0 (x-fraction) with
            # the +gx*gy offset etc.; this mirrors that exactly.
            wts = (
                om0 * om1 * w2,   # c001 (+1)
                om0 * w1 * om2,   # c010 (+gx)
                om0 * w1 * w2,    # c011 (+gx+1)
                w0 * om1 * om2,   # c100 (+gx*gy)
                w0 * om1 * w2,    # c101 (+gx*gy+1)
                w0 * w1 * om2,    # c110 (+gx*gy+gx)
                w0 * w1 * w2,     # c111 (+gx*gy+gx+1)
            )

            # Weight-side clamp: a corner with raw index >= E falls back to the
            # (clamped) c000 row, i.e. its weight folds into the base weight.
            w_base = om0 * om1 * om2
            eff = []
            for off_k, w_k in zip(offs, wts):
                valid = c000 < (E - off_k)                 # [1, TN] bool
                w_base = w_base + jnp.where(valid, 0.0, w_k)
                eff.append((off_k, jnp.where(valid, w_k, 0.0)))

            # Fused gather + trilinear interpolation: one [E, TN] row-sparse
            # weight matrix built from a single iota (compares against Python
            # int constants), then ONE MXU matmul.  Coincident corners add,
            # matching the sum of separate gathers.
            d = lax.broadcasted_iota(jnp.int32, (E, tn), 0) - base     # [E, TN]
            acc = jnp.where(d == 0, w_base, 0.0)
            for off_k, w_k in eff:
                acc = acc + jnp.where(d == off_k, w_k, 0.0)

            # [D, E] @ [E, TN] -> [D, TN] lane-dense output tile.
            o_ref[...] = jnp.dot(
                tab_ref[...],
                acc,
                preferred_element_type=jnp.float32,
                precision=lax.Precision.HIGHEST,
            )

        return kernel

    # ------------------------------------------------------------------ #
    # Wrapper
    # ------------------------------------------------------------------ #
    def __call__(self, x):
        """x: [N, 3] float32 points. Returns [N, embedding_dim] float32."""
        N = x.shape[0]
        D, E = self.embedding_dim, self.num_embedding
        TN = self._pick_block_n(N)

        # Pad N up to a multiple of the tile with an in-range point (box_min).
        n_pad = (-N) % TN
        if n_pad:
            pad_row = jnp.asarray(self.box_min, jnp.float32)[None, :]
            x = jnp.concatenate([x, jnp.broadcast_to(pad_row, (n_pad, 3))], axis=0)
        Np = N + n_pad

        # Layout plumbing: present points on the 128-lane axis.
        xt = jnp.transpose(x)                       # [3, Np]

        out_t = pl.pallas_call(
            self._make_kernel(),
            out_shape=jax.ShapeDtypeStruct((D, Np), jnp.float32),
            grid=(Np // TN,),
            in_specs=[
                pl.BlockSpec((3, TN), lambda i: (0, i)),    # points tile [3, TN]
                # Full [D, E] table resident in VMEM; constant index_map so it
                # is only DMA'd once (see TODO(synk) above re: single-buffering
                # / HBM gather at real NSVF table sizes).
                pl.BlockSpec((D, E), lambda i: (0, 0)),
            ],
            out_specs=pl.BlockSpec((D, TN), lambda i: (0, i)),
            compiler_params=pltpu.CompilerParams(
                dimension_semantics=("parallel",),
                vmem_limit_bytes=self._vmem_limit(TN),
            ),
        )(xt, self.table_t)

        out = jnp.transpose(out_t)                  # [Np, D]
        return out[:N] if n_pad else out


def reference_forward(mod: GridEmbeddingPallas, x):
    """Pure-JAX mirror of the torch forward, for correctness checking."""
    gx, gy, _ = mod.grid_size
    E = mod.num_embedding
    box_min = jnp.asarray(mod.box_min)
    scale = jnp.asarray(mod.scale_factor)
    xr = (x - box_min) * scale
    x_idx = jnp.floor(xr)
    xw = xr - x_idx
    c000 = (x_idx[:, 0] + x_idx[:, 1] * gx + x_idx[:, 2] * gx * gy).astype(jnp.int32)
    c001 = c000 + 1
    c010 = c000 + gx
    c100 = c000 + gx * gy
    c011 = c000 + gx + 1
    c101 = c000 + gx * gy + 1
    c110 = c000 + gx * gy + gx
    c111 = c000 + gx * gy + gx + 1
    c000 = jnp.where(c000 >= E, E - 1, c000)
    clamp = lambda c: jnp.where(c >= E, c000, c)
    c001, c010, c100 = clamp(c001), clamp(c010), clamp(c100)
    c011, c101, c110, c111 = clamp(c011), clamp(c101), clamp(c110), clamp(c111)
    tab = mod.table
    v = lambda idx: tab[idx]
    w0 = xw[:, 0:1]; w1 = xw[:, 1:2]; w2 = xw[:, 2:3]
    c00 = v(c000) * (1 - w0) + v(c100) * w0
    c01 = v(c001) * (1 - w0) + v(c101) * w0
    c10 = v(c010) * (1 - w0) + v(c110) * w0
    c11 = v(c011) * (1 - w0) + v(c111) * w0
    c0 = c00 * (1 - w1) + c10 * w1
    c1 = c01 * (1 - w1) + c11 * w1
    return c0 * (1 - w2) + c1 * w2


if __name__ == "__main__":
    key = jax.random.PRNGKey(0)
    k_tab, k_x = jax.random.split(key)

    grid_size = (4, 4, 4)            # num_embedding = 64
    embedding_dim = 32
    bounding_box = ((-1.0, -1.0, -1.0), (1.0, 1.0, 1.0))
    N = 1024                         # -> TN = 128, grid = 8 steps

    mod = GridEmbeddingPallas(grid_size, embedding_dim, bounding_box, k_tab)

    # Points strictly inside the bounding box.
    x = jax.random.uniform(k_x, (N, 3), jnp.float32, minval=-1.0, maxval=0.999)

    out = mod(x)
    out = jax.block_until_ready(out)

    ref = reference_forward(mod, x)
    assert out.shape == (N, embedding_dim)
    assert np.allclose(np.asarray(out), np.asarray(ref), rtol=1e-4, atol=1e-4), (
        "Pallas output mismatch vs reference"
    )
    print("KERNEL_OK")
</pallas_src>

<mosaic_0001>
module attributes {stable_mosaic.version = 11 : i64} {
  func.func @kernel(%arg0: i32, %arg1: memref<3x128xf32, #tpu.memory_space<vmem>>, %arg2: memref<32x64xf32, #tpu.memory_space<vmem>>, %arg3: memref<32x128xf32, #tpu.memory_space<vmem>>) attributes {dimension_semantics = [#tpu.dimension_semantics<parallel>], iteration_bounds = array<i64: 8>, scalar_prefetch = 0 : i64, scratch_operands = 0 : i64, tpu.core_type = #tpu.core_type<tc>, window_params = [{transform_indices = @transform_0, window_bounds = array<i64: 3, 128>}, {pipeline_mode = #tpu.pipeline_mode<synchronous>, transform_indices = @transform_1, window_bounds = array<i64: 32, 64>}, {transform_indices = @transform_2, window_bounds = array<i64: 32, 128>}]} {
    %c0 = arith.constant 0 : index
    %c0_0 = arith.constant 0 : index
    %0 = vector.load %arg1[%c0, %c0_0] : memref<3x128xf32, #tpu.memory_space<vmem>>, vector<1x128xf32>
    %cst = arith.constant -1.000000e+00 : f32
    %1 = vector.broadcast %cst : f32 to vector<1x128xf32>
    %2 = arith.subf %0, %1 : vector<1x128xf32>
    %cst_1 = arith.constant 2.000000e+00 : f32
    %3 = vector.broadcast %cst_1 : f32 to vector<1x128xf32>
    %4 = arith.mulf %2, %3 : vector<1x128xf32>
    %c1 = arith.constant 1 : index
    %c0_2 = arith.constant 0 : index
    %5 = vector.load %arg1[%c1, %c0_2] : memref<3x128xf32, #tpu.memory_space<vmem>>, vector<1x128xf32>
    %cst_3 = arith.constant -1.000000e+00 : f32
    %6 = vector.broadcast %cst_3 : f32 to vector<1x128xf32>
    %7 = arith.subf %5, %6 : vector<1x128xf32>
    %cst_4 = arith.constant 2.000000e+00 : f32
    %8 = vector.broadcast %cst_4 : f32 to vector<1x128xf32>
    %9 = arith.mulf %7, %8 : vector<1x128xf32>
    %c2 = arith.constant 2 : index
    %c0_5 = arith.constant 0 : index
    %10 = vector.load %arg1[%c2, %c0_5] : memref<3x128xf32, #tpu.memory_space<vmem>>, vector<1x128xf32>
    %cst_6 = arith.constant -1.000000e+00 : f32
    %11 = vector.broadcast %cst_6 : f32 to vector<1x128xf32>
    %12 = arith.subf %10, %11 : vector<1x128xf32>
    %cst_7 = arith.constant 2.000000e+00 : f32
    %13 = vector.broadcast %cst_7 : f32 to vector<1x128xf32>
    %14 = arith.mulf %12, %13 : vector<1x128xf32>
    %15 = math.floor %4 : vector<1x128xf32>
    %16 = math.floor %9 : vector<1x128xf32>
    %17 = math.floor %14 : vector<1x128xf32>
    %18 = arith.subf %4, %15 : vector<1x128xf32>
    %19 = arith.subf %9, %16 : vector<1x128xf32>
    %20 = arith.subf %14, %17 : vector<1x128xf32>
    %cst_8 = arith.constant 1.000000e+00 : f32
    %21 = vector.broadcast %cst_8 : f32 to vector<1x128xf32>
    %22 = arith.subf %21, %18 : vector<1x128xf32>
    %cst_9 = arith.constant 1.000000e+00 : f32
    %23 = vector.broadcast %cst_9 : f32 to vector<1x128xf32>
    %24 = arith.subf %23, %19 : vector<1x128xf32>
    %cst_10 = arith.constant 1.000000e+00 : f32
    %25 = vector.broadcast %cst_10 : f32 to vector<1x128xf32>
    %26 = arith.subf %25, %20 : vector<1x128xf32>
    %cst_11 = arith.constant 4.000000e+00 : f32
    %27 = vector.broadcast %cst_11 : f32 to vector<1x128xf32>
    %28 = arith.mulf %16, %27 : vector<1x128xf32>
    %29 = arith.addf %15, %28 : vector<1x128xf32>
    %cst_12 = arith.constant 1.600000e+01 : f32
    %30 = vector.broadcast %cst_12 : f32 to vector<1x128xf32>
    %31 = arith.mulf %17, %30 : vector<1x128xf32>
    %32 = arith.addf %29, %31 : vector<1x128xf32>
    %33 = arith.fptosi %32 : vector<1x128xf32> to vector<1x128xi32>
    %c64_i32 = arith.constant 64 : i32
    %34 = vector.broadcast %c64_i32 : i32 to vector<1x128xi32>
    %35 = arith.cmpi sge, %33, %34 : vector<1x128xi32>
    %c63_i32 = arith.constant 63 : i32
    %36 = vector.broadcast %c63_i32 : i32 to vector<1x128xi32>
    %37 = arith.select %35, %36, %33 : vector<1x128xi1>, vector<1x128xi32>
    %38 = arith.mulf %22, %24 : vector<1x128xf32>
    %39 = arith.mulf %38, %20 : vector<1x128xf32>
    %40 = arith.mulf %22, %19 : vector<1x128xf32>
    %41 = arith.mulf %40, %26 : vector<1x128xf32>
    %42 = arith.mulf %22, %19 : vector<1x128xf32>
    %43 = arith.mulf %42, %20 : vector<1x128xf32>
    %44 = arith.mulf %18, %24 : vector<1x128xf32>
    %45 = arith.mulf %44, %26 : vector<1x128xf32>
    %46 = arith.mulf %18, %24 : vector<1x128xf32>
    %47 = arith.mulf %46, %20 : vector<1x128xf32>
    %48 = arith.mulf %18, %19 : vector<1x128xf32>
    %49 = arith.mulf %48, %26 : vector<1x128xf32>
    %50 = arith.mulf %18, %19 : vector<1x128xf32>
    %51 = arith.mulf %50, %20 : vector<1x128xf32>
    %52 = arith.mulf %22, %24 : vector<1x128xf32>
    %53 = arith.mulf %52, %26 : vector<1x128xf32>
    %c63_i32_13 = arith.constant 63 : i32
    %54 = vector.broadcast %c63_i32_13 : i32 to vector<1x128xi32>
    %55 = arith.cmpi slt, %33, %54 : vector<1x128xi32>
    %cst_14 = arith.constant 0.000000e+00 : f32
    %56 = vector.broadcast %cst_14 : f32 to vector<1x128xf32>
    %57 = arith.select %55, %56, %39 : vector<1x128xi1>, vector<1x128xf32>
    %58 = arith.addf %53, %57 : vector<1x128xf32>
    %cst_15 = arith.constant 0.000000e+00 : f32
    %59 = vector.broadcast %cst_15 : f32 to vector<1x128xf32>
    %60 = arith.select %55, %39, %59 : vector<1x128xi1>, vector<1x128xf32>
    %c60_i32 = arith.constant 60 : i32
    %61 = vector.broadcast %c60_i32 : i32 to vector<1x128xi32>
    %62 = arith.cmpi slt, %33, %61 : vector<1x128xi32>
    %cst_16 = arith.constant 0.000000e+00 : f32
    %63 = vector.broadcast %cst_16 : f32 to vector<1x128xf32>
    %64 = arith.select %62, %63, %41 : vector<1x128xi1>, vector<1x128xf32>
    %65 = arith.addf %58, %64 : vector<1x128xf32>
    %cst_17 = arith.constant 0.000000e+00 : f32
    %66 = vector.broadcast %cst_17 : f32 to vector<1x128xf32>
    %67 = arith.select %62, %41, %66 : vector<1x128xi1>, vector<1x128xf32>
    %c59_i32 = arith.constant 59 : i32
    %68 = vector.broadcast %c59_i32 : i32 to vector<1x128xi32>
    %69 = arith.cmpi slt, %33, %68 : vector<1x128xi32>
    %cst_18 = arith.constant 0.000000e+00 : f32
    %70 = vector.broadcast %cst_18 : f32 to vector<1x128xf32>
    %71 = arith.select %69, %70, %43 : vector<1x128xi1>, vector<1x128xf32>
    %72 = arith.addf %65, %71 : vector<1x128xf32>
    %cst_19 = arith.constant 0.000000e+00 : f32
    %73 = vector.broadcast %cst_19 : f32 to vector<1x128xf32>
    %74 = arith.select %69, %43, %73 : vector<1x128xi1>, vector<1x128xf32>
    %c48_i32 = arith.constant 48 : i32
    %75 = vector.broadcast %c48_i32 : i32 to vector<1x128xi32>
    %76 = arith.cmpi slt, %33, %75 : vector<1x128xi32>
    %cst_20 = arith.constant 0.000000e+00 : f32
    %77 = vector.broadcast %cst_20 : f32 to vector<1x128xf32>
    %78 = arith.select %76, %77, %45 : vector<1x128xi1>, vector<1x128xf32>
    %79 = arith.addf %72, %78 : vector<1x128xf32>
    %cst_21 = arith.constant 0.000000e+00 : f32
    %80 = vector.broadcast %cst_21 : f32 to vector<1x128xf32>
    %81 = arith.select %76, %45, %80 : vector<1x128xi1>, vector<1x128xf32>
    %c47_i32 = arith.constant 47 : i32
    %82 = vector.broadcast %c47_i32 : i32 to vector<1x128xi32>
    %83 = arith.cmpi slt, %33, %82 : vector<1x128xi32>
    %cst_22 = arith.constant 0.000000e+00 : f32
    %84 = vector.broadcast %cst_22 : f32 to vector<1x128xf32>
    %85 = arith.select %83, %84, %47 : vector<1x128xi1>, vector<1x128xf32>
    %86 = arith.addf %79, %85 : vector<1x128xf32>
    %cst_23 = arith.constant 0.000000e+00 : f32
    %87 = vector.broadcast %cst_23 : f32 to vector<1x128xf32>
    %88 = arith.select %83, %47, %87 : vector<1x128xi1>, vector<1x128xf32>
    %c44_i32 = arith.constant 44 : i32
    %89 = vector.broadcast %c44_i32 : i32 to vector<1x128xi32>
    %90 = arith.cmpi slt, %33, %89 : vector<1x128xi32>
    %cst_24 = arith.constant 0.000000e+00 : f32
    %91 = vector.broadcast %cst_24 : f32 to vector<1x128xf32>
    %92 = arith.select %90, %91, %49 : vector<1x128xi1>, vector<1x128xf32>
    %93 = arith.addf %86, %92 : vector<1x128xf32>
    %cst_25 = arith.constant 0.000000e+00 : f32
    %94 = vector.broadcast %cst_25 : f32 to vector<1x128xf32>
    %95 = arith.select %90, %49, %94 : vector<1x128xi1>, vector<1x128xf32>
    %c43_i32 = arith.constant 43 : i32
    %96 = vector.broadcast %c43_i32 : i32 to vector<1x128xi32>
    %97 = arith.cmpi slt, %33, %96 : vector<1x128xi32>
    %cst_26 = arith.constant 0.000000e+00 : f32
    %98 = vector.broadcast %cst_26 : f32 to vector<1x128xf32>
    %99 = arith.select %97, %98, %51 : vector<1x128xi1>, vector<1x128xf32>
    %100 = arith.addf %93, %99 : vector<1x128xf32>
    %cst_27 = arith.constant 0.000000e+00 : f32
    %101 = vector.broadcast %cst_27 : f32 to vector<1x128xf32>
    %102 = arith.select %97, %51, %101 : vector<1x128xi1>, vector<1x128xf32>
    %103 = tpu.iota {dimensions = array<i32: 0>} : vector<64x128xi32>
    %104 = vector.broadcast %37 : vector<1x128xi32> to vector<64x128xi32>
    %105 = arith.subi %103, %104 : vector<64x128xi32>
    %c0_i32 = arith.constant 0 : i32
    %106 = vector.broadcast %c0_i32 : i32 to vector<64x128xi32>
    %107 = arith.cmpi eq, %105, %106 : vector<64x128xi32>
    %cst_28 = arith.constant 0.000000e+00 : f32
    %108 = vector.shape_cast %100 : vector<1x128xf32> to vector<1x128xf32>
    %109 = vector.broadcast %108 : vector<1x128xf32> to vector<64x128xf32>
    %110 = vector.broadcast %cst_28 : f32 to vector<64x128xf32>
    %111 = arith.select %107, %109, %110 : vector<64x128xi1>, vector<64x128xf32>
    %c1_i32 = arith.constant 1 : i32
    %112 = vector.broadcast %c1_i32 : i32 to vector<64x128xi32>
    %113 = arith.cmpi eq, %105, %112 : vector<64x128xi32>
    %cst_29 = arith.constant 0.000000e+00 : f32
    %114 = vector.shape_cast %60 : vector<1x128xf32> to vector<1x128xf32>
    %115 = vector.broadcast %114 : vector<1x128xf32> to vector<64x128xf32>
    %116 = vector.broadcast %cst_29 : f32 to vector<64x128xf32>
    %117 = arith.select %113, %115, %116 : vector<64x128xi1>, vector<64x128xf32>
    %118 = arith.addf %111, %117 : vector<64x128xf32>
    %c4_i32 = arith.constant 4 : i32
    %119 = vector.broadcast %c4_i32 : i32 to vector<64x128xi32>
    %120 = arith.cmpi eq, %105, %119 : vector<64x128xi32>
    %cst_30 = arith.constant 0.000000e+00 : f32
    %121 = vector.shape_cast %67 : vector<1x128xf32> to vector<1x128xf32>
    %122 = vector.broadcast %121 : vector<1x128xf32> to vector<64x128xf32>
    %123 = vector.broadcast %cst_30 : f32 to vector<64x128xf32>
    %124 = arith.select %120, %122, %123 : vector<64x128xi1>, vector<64x128xf32>
    %125 = arith.addf %118, %124 : vector<64x128xf32>
    %c5_i32 = arith.constant 5 : i32
    %126 = vector.broadcast %c5_i32 : i32 to vector<64x128xi32>
    %127 = arith.cmpi eq, %105, %126 : vector<64x128xi32>
    %cst_31 = arith.constant 0.000000e+00 : f32
    %128 = vector.shape_cast %74 : vector<1x128xf32> to vector<1x128xf32>
    %129 = vector.broadcast %128 : vector<1x128xf32> to vector<64x128xf32>
    %130 = vector.broadcast %cst_31 : f32 to vector<64x128xf32>
    %131 = arith.select %127, %129, %130 : vector<64x128xi1>, vector<64x128xf32>
    %132 = arith.addf %125, %131 : vector<64x128xf32>
    %c16_i32 = arith.constant 16 : i32
    %133 = vector.broadcast %c16_i32 : i32 to vector<64x128xi32>
    %134 = arith.cmpi eq, %105, %133 : vector<64x128xi32>
    %cst_32 = arith.constant 0.000000e+00 : f32
    %135 = vector.shape_cast %81 : vector<1x128xf32> to vector<1x128xf32>
    %136 = vector.broadcast %135 : vector<1x128xf32> to vector<64x128xf32>
    %137 = vector.broadcast %cst_32 : f32 to vector<64x128xf32>
    %138 = arith.select %134, %136, %137 : vector<64x128xi1>, vector<64x128xf32>
    %139 = arith.addf %132, %138 : vector<64x128xf32>
    %c17_i32 = arith.constant 17 : i32
    %140 = vector.broadcast %c17_i32 : i32 to vector<64x128xi32>
    %141 = arith.cmpi eq, %105, %140 : vector<64x128xi32>
    %cst_33 = arith.constant 0.000000e+00 : f32
    %142 = vector.shape_cast %88 : vector<1x128xf32> to vector<1x128xf32>
    %143 = vector.broadcast %142 : vector<1x128xf32> to vector<64x128xf32>
    %144 = vector.broadcast %cst_33 : f32 to vector<64x128xf32>
    %145 = arith.select %141, %143, %144 : vector<64x128xi1>, vector<64x128xf32>
    %146 = arith.addf %139, %145 : vector<64x128xf32>
    %c20_i32 = arith.constant 20 : i32
    %147 = vector.broadcast %c20_i32 : i32 to vector<64x128xi32>
    %148 = arith.cmpi eq, %105, %147 : vector<64x128xi32>
    %cst_34 = arith.constant 0.000000e+00 : f32
    %149 = vector.shape_cast %95 : vector<1x128xf32> to vector<1x128xf32>
    %150 = vector.broadcast %149 : vector<1x128xf32> to vector<64x128xf32>
    %151 = vector.broadcast %cst_34 : f32 to vector<64x128xf32>
    %152 = arith.select %148, %150, %151 : vector<64x128xi1>, vector<64x128xf32>
    %153 = arith.addf %146, %152 : vector<64x128xf32>
    %c21_i32 = arith.constant 21 : i32
    %154 = vector.broadcast %c21_i32 : i32 to vector<64x128xi32>
    %155 = arith.cmpi eq, %105, %154 : vector<64x128xi32>
    %cst_35 = arith.constant 0.000000e+00 : f32
    %156 = vector.shape_cast %102 : vector<1x128xf32> to vector<1x128xf32>
    %157 = vector.broadcast %156 : vector<1x128xf32> to vector<64x128xf32>
    %158 = vector.broadcast %cst_35 : f32 to vector<64x128xf32>
    %159 = arith.select %155, %157, %158 : vector<64x128xi1>, vector<64x128xf32>
    %160 = arith.addf %153, %159 : vector<64x128xf32>
    %c0_36 = arith.constant 0 : index
    %c0_37 = arith.constant 0 : index
    %161 = vector.load %arg2[%c0_36, %c0_37] : memref<32x64xf32, #tpu.memory_space<vmem>>, vector<32x64xf32>
    %cst_38 = arith.constant dense<0.000000e+00> : vector<32x128xf32>
    %162 = tpu.matmul %161, %160, %cst_38 {dimension_numbers = #tpu.dot_dimension_numbers<[1], [0], [0], [1], [0, 0, 1, 1], [], []>, precision = #tpu.contract_precision<fp32>} : vector<32x64xf32>, vector<64x128xf32>, vector<32x128xf32> -> vector<32x128xf32>
    %c0_39 = arith.constant 0 : index
    %c0_40 = arith.constant 0 : index
    %163 = vector.load %arg3[%c0_39, %c0_40] : memref<32x128xf32, #tpu.memory_space<vmem>>, vector<32x128xf32>
    tpu.vector_store %arg3[%c0_39, %c0_40], %162 {strides = array<i32>} : memref<32x128xf32, #tpu.memory_space<vmem>>, vector<32x128xf32>,
    return
  }
  func.func @transform_0(%arg0: i32) -> (i32, i32) {
    %c0_i32 = arith.constant 0 : i32
    %c0_i32_0 = arith.constant 0 : i32
    return %c0_i32, %arg0 : i32, i32
  }
  func.func @transform_1(%arg0: i32) -> (i32, i32) {
    %c0_i32 = arith.constant 0 : i32
    %c0_i32_0 = arith.constant 0 : i32
    %c0_i32_1 = arith.constant 0 : i32
    return %c0_i32, %c0_i32_0 : i32, i32
  }
  func.func @transform_2(%arg0: i32) -> (i32, i32) {
    %c0_i32 = arith.constant 0 : i32
    %c0_i32_0 = arith.constant 0 : i32
    return %c0_i32, %arg0 : i32, i32
  }
}

</mosaic_0001>

<bundles_post_ra>
// kernel: tpu_custom_call.1
= control target key start
LH: loop header
LB: loop body
LE: loop exit
PB: predicated region body
PF: predicated region fallthrough
CT: control target
= control target key end

     0   :  { %7 = vsyncpa [#allocation3], 0  ;;  %s2334_s0 = inlined_call_operand.hbm [shape: f32[3,1024], index: 0, kind: input, shape index: {}]   ;;  %s2335_s1 = inlined_call_operand.hbm [shape: f32[32,64], index: 1, kind: input, shape index: {}]   ;;  %s2336_s2 = inlined_call_operand.hbm [shape: f32[32,1024], index: 2, kind: output, shape index: {}]  }
   0x1   :  { %9 = vsyncpa [#allocation3 + $0x1], 0 }
   0x2   :  { %10 = vsyncpa [#allocation6], 0 }
   0x3   :  { %11 = vsyncpa [#allocation4], 0 }
   0x4   :  { %13 = vsyncpa [#allocation4 + $0x1], 0  ;;  %s1813_s9 = smov 0   ;;  %s1815_s10 = smov 0  }
   0x5   :  { %s1817_s11 = smov 0   ;;  %s1819_s12 = smov 0  }
   0x6 LB: > { %s1834_s13 = sadd.s32 4294967295, %s1788_s12   ;;  %s1259_s14 = sadd.s32 4294967294, %s1788_s12   ;;  %s1788_s12 = sphi %s1819_s12, %s2355_s12   ;;  %s1784_s11 = sphi %s1817_s11, %s2354_s11   ;;  %s1780_s10 = sphi %s1815_s10, %s2353_s10   ;;  %s1776_s9 = sphi %s1813_s9, %s2352_s9  }
   0x7   : > { %p39_p0 = scmp.ne.s32.totalorder %s1780_s10, %s1776_s9  ;;  %p2337_p1 = scmp.eq.s32.totalorder %s1834_s13, 0 }
   0x8   : > { %p90_p3 = scmp.eq.s32.totalorder %s1259_s14, 7  ;;  %p1260_p5 = scmp.ge.s32.totalorder %s1788_s12, 1 }
   0x9   : > { %p1843_p4 = por %p2337_p1, %p39_p0  ;;  %p97_p7 = scmp.lt.s32.totalorder %s1788_s12, 9 }
   0xa   : > { %p1848_p6 = por %p90_p3, %p39_p0  ;;  %s1790_s18 = smov [#allocation5]  }
   0xb   : > { %s2340_s15 = scalar_select %p1843_p4, 1, 0 }
   0xc   : > { %s2341_s16 = scalar_select %p1848_p6, 1, 0 }
   0xd   : > { %p1853_p8 = pnand %p1260_p5, %p97_p7  ;;  %s109_s19 = sshll.u32 %s1790_s18, 4  ;;  %s110_s19 = int_to_ptr.vmem [resolvable:$true] %s109_s19 }
   0xe   : > { %s1866_s21 = sadd.s32 1, %s1788_s12   ;;  %s26_s22 = sadd.s32 1, %s1784_s11 }
   0xf   : > { %s2342_s17 = scalar_select %p1853_p8, 1, 0 }
  0x10   : > { %p1606_p9 = pneg %p1853_p8  ;;  %s23_s23 = ssub.s32 %s1788_s12, %s1866_s21 }
  0x11   : > { %s1660_s26 = scalar_lea.hbm %s2335_s1, 512 }
  0x12   : > { %p1861_p10 = pnand %p1606_p9, %p2337_p1  ;;  %p1661_p11 = scmp.ne.s32.totalorder %s2335_s1, %s1660_s26 }
  0x13   : > { %p1667_p3 = scmp.lt.u32.totalorder %s1660_s26, %s2335_s1 }
  0x14   : > { %p1662_p12 = pneg %p1861_p10 }
  0x16   : > { %p1663_p13 = pnand %p1662_p12, %p1661_p11 }
  0x18   : > { %p1664_p0 = pneg %p1663_p13 }
  0x1a   : > { %p1669_p5 = pnand %p1667_p3, %p1664_p0 }
  0x1c   : > { %1672 = shalt.err (!%p1669_p5)
}
  0x1d   : > { %s1673_s3 = scalar_lea.vmem %s110_s19, 512  ;;  %p1681_p2 = scmp.lt.s32.totalorder %s110_s19, %s110_s19 }
  0x1e   : > { %p1674_p7 = scmp.ne.s32.totalorder %s110_s19, %s1673_s3  ;;  %p1682_p6 = scmp.lt.s32.totalorder %s1673_s3, %s1673_s3 }
  0x20   : > { %p1676_p9 = pnand %p1674_p7, %p1662_p12  ;;  %p1683_p4 = por %p1682_p6, %p1681_p2 }
  0x22   : > { %p1677_p1 = pneg %p1676_p9 }
  0x24   : > { %p1684_p8 = pnand %p1683_p4, %p1677_p1 }
  0x26   : > { %1687 = shalt.err (!%p1684_p8)
}
  0x27   : > { %s1791_s4 = smov 128   ;;  %s1792_s5 = smov 8  }
  0x28   : > { %1609 = dma.hbm_to_vmem [thread:$0]  (!%p1861_p10), %s2335_s1, 512, %s110_s19, [#allocation6], %s1791_s4, %s1791_s4, %s1792_s5  }
  0x29   : > { %p24_p11 = scmp.eq.s32.totalorder %s23_s23, 0  ;;  %p33_p2 = scmp.ne.s32.totalorder %s1784_s11, %s1780_s10 }
  0x2a   : > { %p34_p1 = scmp.eq.s32.totalorder %s1788_s12, 0  ;;  %p1619_p4 = scmp.lt.s32.totalorder %s1788_s12, 8 }
  0x2b   : > { %s1892_s8 = scalar_select %p24_p11, %s1784_s11, %s26_s22  }
  0x2c   : > { %p35_p6 = por %p34_p1, %p33_p2  ;;  %p2344_p8 = scmp.eq.s32.totalorder %s1834_s13, 7 }
  0x2d   : > { %s123_s18 = sand.u32 1, %s1784_s11   ;;  %s1264_s24 = sshll.u32 %s1788_s12, 6 }
  0x2e   : > { %p1896_p12 = por %p2344_p8, %p33_p2  ;;  %s1263_s25 = sshll.u32 %s123_s18, 2 }
  0x2f   : > { %s1905_s27 = scalar_lea.hbm %s2334_s0, %s1264_s24  ;;  %s127_s19 = scalar_lea.vmem [#allocation2], %s1263_s25 }
  0x30   : > { %s134_s22 = sshll.u32 %s127_s19, 4  ;;  %p1907_p10 = pnand %p1619_p4, %p35_p6  ;;  %s1911_s22 = int_to_ptr.vmem [resolvable:$true] %s134_s22 }
  0x31   : > { %s124_s28 = scalar_lea.sflag [#allocation3], %s123_s18  ;;  %s1688_s29 = scalar_lea.hbm %s1905_s27, 64 }
  0x32   : > { %p1689_p13 = scmp.ne.s32.totalorder %s1905_s27, %s1688_s29  ;;  %p1690_p0 = pneg %p1907_p10 }
  0x33   : > { %s1693_s4 = scalar_lea.hbm %s2334_s0, 512  ;;  %p1694_p7 = scmp.lt.u32.totalorder %s1905_s27, %s2334_s0 }
  0x34   : > { %p1691_p3 = pnand %p1690_p0, %p1689_p13  ;;  %p1695_p9 = scmp.lt.u32.totalorder %s1693_s4, %s1688_s29 }
  0x35   : > { %p1697_p2 = scmp.lt.u32.totalorder %s1688_s29, %s1905_s27 }
  0x36   : > { %p1692_p5 = pneg %p1691_p3  ;;  %p1696_p11 = por %p1695_p9, %p1694_p7 }
  0x38   : > { %p1698_p1 = por %p1697_p2, %p1696_p11 }
  0x3a   : > { %p1699_p4 = pnand %p1698_p1, %p1692_p5 }
  0x3c   : > { %1702 = shalt.err (!%p1699_p4)
}
  0x3d   : > { %s1703_s7 = scalar_lea.vmem %s1911_s22, 64  ;;  %s1793_s18 = smov [#allocation2]  }
  0x3e   : > { %p1704_p6 = scmp.ne.s32.totalorder %s1911_s22, %s1703_s7  ;;  %s1708_s24 = sshll.u32 %s1793_s18, 4  ;;  %s1709_s24 = int_to_ptr.vmem [resolvable:$false] %s1708_s24 }
  0x3f   : > { %s1710_s25 = scalar_lea.vmem %s1709_s24, 128  ;;  %p1711_p3 = scmp.lt.s32.totalorder %s1911_s22, %s1709_s24 }
  0x40   : > { %p1706_p8 = pnand %p1704_p6, %p1690_p0  ;;  %p1712_p7 = scmp.lt.s32.totalorder %s1710_s25, %s1703_s7 }
  0x42   : > { %p1707_p13 = pneg %p1706_p8  ;;  %p1713_p9 = por %p1712_p7, %p1711_p3 }
  0x44   : > { %p1714_p11 = pnand %p1713_p9, %p1707_p13 }
  0x46   : > { %1717 = shalt.err (!%p1714_p11)
}
  0x47   : > { %1613 = dma.hbm_to_vmem [thread:$0]  (!%p1907_p10), %s1905_s27, 64, %s1911_s22, %s124_s28  }
  0x48   : > { %p2347_p5 = scmp.ne.s32.totalorder %s2342_s17, 0 }
  0x49   : > { %s1941_s20 = sand.u32 (!%p2347_p5), 1, %s1780_s10   ;;  %p2348_p0 = scmp.ne.s32.totalorder (!%p2347_p5), %s2340_s15, 0 }
  0x4a   : > { %143 = sbr.rel (%p2347_p5) target bundleno = 441 (0x1b9), region = 28  ;;  %s1266_s26 = sshll.u32 (!%p2347_p5), %s1941_s20, 2 }
  0x4b   : > { %s146_s19 = scalar_lea.sflag (!%p2347_p5), [#allocation3], %s1941_s20  ;;  %s149_s29 = scalar_lea.vmem (!%p2347_p5), [#allocation2], %s1266_s26 }
  0x51   : > { %1763 = dma.done.wait (%p2348_p0), %s146_s19, 64  }
  0x52   : > { %1765 = vsyncadd (%p2348_p0), %s146_s19, 4294967232  ;;  %p2349_p2 = scmp.eq.s32.totalorder %s1834_s13, 0 }
  0x54   : > { %1767 = dma.done.wait (%p2349_p2), [#allocation6], 512   ;;  %p2350_p10 = pmov %p2349_p2 }
  0x55   : > { %vm480_vm0 = vcmask 523264   ;;  %v174_v0 = vld [vmem:[%s149_s29] sm:$0x1]  ;;  %v177_v1 = vld [vmem:[%s149_s29 + $0x1] sm:$0x1]  ;;  %v239_v3 = vlaneseq  ;;  %v476_v7 = vld [vmem:[#allocation5] sm:$0xff] }
  0x56   : > { %1769 = vsyncadd (%p2350_p10), [#allocation6], 4294966784  ;;  %v180_v2 = vld [vmem:[%s149_s29 + $0x2] sm:$0x1]  ;;  %v1269_v4 = vadd.f32 1.0, %v174_v0  ;;  %v1270_v5 = vadd.f32 1.0, %v177_v1 }
  0x57   : > { %v1271_v6 = vadd.f32 1.0, %v180_v2  ;;  %v477_v8 = vld [vmem:[#allocation5 + $0x8] sm:$0xff]  ;;  %v478_v9 = vld [vmem:[#allocation5 + $0x10] sm:$0xff]  ;;  %v482_v10 = vsel %vm480_vm0, %v476_v7, 0  ;;  %v1958_v17 = vshrl.u32 %v239_v3, 7  ;;  %v479_v30 = vld [vmem:[#allocation5 + $0x18] sm:$0xff] }
  0x58   : > { %v485_v11 = vsel %vm480_vm0, %v477_v8, 0  ;;  %v488_v12 = vsel %vm480_vm0, %v478_v9, 0  ;;  %v176_v13 = vmul.f32 2.0, %v1269_v4  ;;  %v179_v14 = vmul.f32 2.0, %v1270_v5  ;;  %s1268_s15 = sshll.u32 %s1941_s20, 5  ;;  %s1273_s22 = sshll.u32 %s1834_s13, 7 }
  0x59   : > { %v182_v15 = vmul.f32 2.0, %v1271_v6  ;;  %v1956_v16 = vand.u32 4294901760, %v482_v10  ;;  %v1960_v18 = vand.u32 4294901760, %v485_v11  ;;  %v1966_v23 = vadd.s32 8, %v1958_v17  ;;  %s173_s17 = scalar_lea.vmem [#allocation7], %s1268_s15  ;;  %s2291_s30 = scalar_lea.hbm %s2336_s2, %s1273_s22 }
  0x5a   : > { %v183_v19 = vfloor.f32 %v176_v13  ;;  %v184_v20 = vfloor.f32 %v179_v14  ;;  %v1971_v25 = vand.u32 4294901760, %v488_v12  ;;  %v1974_v32 = vsub.s32 0, %v1958_v17  ;;  %s1176_s27 = sshll.u32 %s173_s17, 4  ;;  %s1164_s13 = scalar_lea.sflag [#allocation4], %s1941_s20  ;;  %s2286_s27 = int_to_ptr.vmem [resolvable:$true] %s1176_s27 }
  0x5b   : > { %v185_v21 = vfloor.f32 %v182_v15  ;;  %v1963_v22 = vsub.f32 %v482_v10, %v1956_v16  ;;  %v1969_v24 = vsub.f32 %v485_v11, %v1960_v18  ;;  %v1977_v33 = vadd.s32 16, %v1958_v17  ;;  %s1718_s3 = scalar_lea.vmem %s2286_s27, 512  ;;  %s1794_s4 = smov [#allocation7]  }
  0x5c   : > { %v186_v26 = vsub.f32 %v176_v13, %v183_v19  ;;  %v187_v27 = vsub.f32 %v179_v14, %v184_v20  ;;  %v192_v29 = vmul.f32 4.0, %v184_v20  ;;  %v1981_v38 = vadd.s32 24, %v1958_v17  ;;  %p1719_p1 = scmp.ne.s32.totalorder %s2286_s27, %s1718_s3  ;;  %s1722_s5 = sshll.u32 %s1794_s4, 4  ;;  %s1723_s5 = int_to_ptr.vmem [resolvable:$false] %s1722_s5 }
  0x5d   : > { %v188_v28 = vsub.f32 %v182_v15, %v185_v21  ;;  %v194_v31 = vmul.f32 16.0, %v185_v21  ;;  %v568_v34 = vand.u32 4294901760, %v1963_v22  ;;  %v1985_v41 = vsub.f32 %v488_v12, %v1971_v25  ;;  %s1724_s6 = scalar_lea.vmem %s1723_s5, 1024  ;;  %p1725_p8 = scmp.lt.s32.totalorder %s2286_s27, %s1723_s5 }
  0x5e   : > { %v189_v35 = vsub.f32 1.0, %v186_v26  ;;  %v190_v36 = vsub.f32 1.0, %v187_v27  ;;  %v193_v37 = vadd.f32 %v192_v29, %v183_v19  ;;  %v1988_v42 = vsel %vm480_vm0, %v479_v30, 0  ;;  %p1720_p4 = pnand %p1719_p1, %p1896_p12  ;;  %p1726_p13 = scmp.lt.s32.totalorder %s1724_s6, %s1718_s3 }
  0x5f   : > { %v191_v39 = vsub.f32 1.0, %v188_v28  ;;  %v569_v40 = vsub.f32 %v1963_v22, %v568_v34  ;;  %1430 = vmatprep.mubr.f32.mxu0 %v568_v34  ;;  %v578_v46 = vand.u32 4294901760, %v1969_v24  ;;  %v207_v48 = vmul.f32 %v187_v27, %v186_v26 }
  0x60   : > { %v195_v43 = vadd.f32 %v194_v31, %v193_v37  ;;  %v199_v44 = vmul.f32 %v190_v36, %v189_v35  ;;  %v201_v45 = vmul.f32 %v189_v35, %v187_v27  ;;  %v204_v47 = vmul.f32 %v190_v36, %v186_v26  ;;  %p1721_p6 = pneg %p1720_p4  ;;  %p1727_p3 = por %p1726_p13, %p1725_p8 }
  0x61   : > { %v244_v49 = vadd.s32 32, %v1958_v17  ;;  %v570_v50 = vand.u32 4294901760, %v569_v40  ;;  %v1993_v52 = vadd.s32 40, %v1958_v17  ;;  %v1996_v53 = vadd.s32 48, %v1958_v17 }
  0x62   : > { %v1596_v51 = vtrunc.f32 %v195_v43  ;;  %v1999_v54 = vadd.s32 56, %v1958_v17  ;;  %v200_v55 = vmul.f32 %v199_v44, %v188_v28  ;;  %v202_v56 = vmul.f32 %v201_v45, %v191_v39  ;;  %p1728_p7 = pnand %p1727_p3, %p1721_p6 }
  0x63   : > { %1364 = vmatprep.mubr.f32.mxu1 %v570_v50  ;;  %v588_v57 = vand.u32 4294901760, %v1985_v41  ;;  %v2003_v58 = vand.u32 4294901760, %v1988_v42  ;;  %v203_v60 = vmul.f32 %v201_v45, %v188_v28  ;;  %v210_v61 = vmul.f32 %v199_v44, %v191_v39 }
  0x64   : > { %v1597_v59 = vcvt.f32.s32 %v1596_v51  ;;  %v2008_v62 = vsub.f32 %v1969_v24, %v578_v46  ;;  %v205_v63 = vmul.f32 %v204_v47, %v191_v39  ;;  %v206_v0 = vmul.f32 %v204_v47, %v188_v28 }
  0x65   : > { %v208_v1 = vmul.f32 %v207_v48, %v191_v39  ;;  %v209_v2 = vmul.f32 %v207_v48, %v188_v28 }
  0x66   : > { %vm197_vm1 = vcmp.ge.s32.totalorder %v1597_v59, 64  ;;  %vm211_vm2 = vcmp.lt.s32.totalorder %v1597_v59, 63  ;;  %vm215_vm3 = vcmp.lt.s32.totalorder %v1597_v59, 60  ;;  %vm219_vm4 = vcmp.lt.s32.totalorder %v1597_v59, 59 }
  0x67   : > { %v198_v3 = vsel %vm197_vm1, 63, %v1597_v59  ;;  %v212_v4 = vsel %vm211_vm2, 0.0, %v200_v55  ;;  %v214_v5 = vsel %vm211_vm2, %v200_v55, 0.0  ;;  %v216_v6 = vsel %vm215_vm3, 0.0, %v202_v56 }
  0x68   : > { %v213_v7 = vadd.f32 %v212_v4, %v210_v61  ;;  %v218_v8 = vsel %vm215_vm3, %v202_v56, 0.0  ;;  %v220_v9 = vsel %vm219_vm4, 0.0, %v203_v60  ;;  %v222_v10 = vsel %vm219_vm4, %v203_v60, 0.0 }
  0x69   : > { %vm223_vm5 = vcmp.lt.s32.totalorder %v1597_v59, 48  ;;  %vm227_vm6 = vcmp.lt.s32.totalorder %v1597_v59, 47  ;;  %vm231_vm7 = vcmp.lt.s32.totalorder %v1597_v59, 44  ;;  %vm235_vm8 = vcmp.lt.s32.totalorder %v1597_v59, 43 }
  0x6a   : > { %v217_v11 = vadd.f32 %v216_v6, %v213_v7  ;;  %v224_v12 = vsel %vm223_vm5, 0.0, %v205_v63  ;;  %v226_v13 = vsel %vm223_vm5, %v205_v63, 0.0  ;;  %v228_v14 = vsel %vm227_vm6, 0.0, %v206_v0 }
  0x6b   : > { %v230_v15 = vsel %vm227_vm6, %v206_v0, 0.0  ;;  %v232_v19 = vsel %vm231_vm7, 0.0, %v208_v1  ;;  %v234_v20 = vsel %vm231_vm7, %v208_v1, 0.0  ;;  %v236_v21 = vsel %vm235_vm8, 0.0, %v209_v2 }
  0x6c   : > { %v221_v26 = vadd.f32 %v220_v9, %v217_v11  ;;  %v238_v27 = vsel %vm235_vm8, %v209_v2, 0.0  ;;  %v2011_v28 = vrot.slane %v198_v3, %v1974_v32  ;;  %v2014_v29 = vrot.slane %v214_v5, %v1974_v32 }
  0x6d   : > { %v2017_v30 = vrot.slane %v218_v8, %v1974_v32  ;;  %v2020_v31 = vrot.slane %v222_v10, %v1974_v32  ;;  %v2023_v34 = vrot.slane %v226_v13, %v1974_v32  ;;  %v2026_v35 = vrot.slane %v230_v15, %v1974_v32 }
  0x6e   : > { %v225_v36 = vadd.f32 %v224_v12, %v221_v26  ;;  %v252_v37 = vsub.s32 %v1958_v17, %v2011_v28  ;;  %v253_v39 = vsub.s32 %v1966_v23, %v2011_v28  ;;  %v2033_v40 = vrot.slane %v234_v20, %v1974_v32 }
  0x6f   : > { %v2036_v43 = vrot.slane %v238_v27, %v1974_v32  ;;  %v2040_v44 = vsub.s32 %v1977_v33, %v2011_v28  ;;  %v2044_v45 = vsub.s32 %v1981_v38, %v2011_v28  ;;  %v2047_v47 = vsub.s32 %v244_v49, %v2011_v28 }
  0x70   : > { %v229_v17 = vadd.f32 %v228_v14, %v225_v36  ;;  %vm260_vm9 = vcmp.eq.s32.totalorder %v252_v37, 0  ;;  %vm261_vm10 = vcmp.eq.s32.totalorder %v253_v39, 0  ;;  %vm280_vm11 = vcmp.eq.s32.totalorder %v252_v37, 1 }
  0x71   : > { %vm281_vm12 = vcmp.eq.s32.totalorder %v253_v39, 1  ;;  %v292_v23 = vsel %vm280_vm11, %v2014_v29, 0.0  ;;  %vm308_vm13 = vcmp.eq.s32.totalorder %v252_v37, 4  ;;  %vm309_vm14 = vcmp.eq.s32.totalorder %v253_v39, 4 }
  0x72   : > { %v233_v48 = vadd.f32 %v232_v19, %v229_v17  ;;  %v293_v33 = vsel %vm281_vm12, %v2014_v29, 0.0  ;;  %v320_v50 = vsel %vm308_vm13, %v2017_v30, 0.0  ;;  %v321_v38 = vsel %vm309_vm14, %v2017_v30, 0.0 }
  0x73   : > { %vm336_vm15 = vcmp.eq.s32.totalorder %v252_v37, 5  ;;  %vm337_vm0 = vcmp.eq.s32.totalorder %v253_v39, 5  ;;  %vm364_vm1 = vcmp.eq.s32.totalorder %v252_v37, 16  ;;  %vm365_vm2 = vcmp.eq.s32.totalorder %v253_v39, 16 }
  0x74   : > { %v237_v49 = vadd.f32 %v236_v21, %v233_v48  ;;  %v348_v51 = vsel %vm336_vm15, %v2020_v31, 0.0  ;;  %v349_v55 = vsel %vm337_vm0, %v2020_v31, 0.0  ;;  %v376_v56 = vsel %vm364_vm1, %v2023_v34, 0.0 }
  0x75   : > { %v377_v59 = vsel %vm365_vm2, %v2023_v34, 0.0  ;;  %vm392_vm3 = vcmp.eq.s32.totalorder %v252_v37, 17  ;;  %vm393_vm4 = vcmp.eq.s32.totalorder %v253_v39, 17  ;;  %vm420_vm5 = vcmp.eq.s32.totalorder %v252_v37, 20 }
  0x76   : > { %v2058_v60 = vrot.slane %v237_v49, %v1974_v32  ;;  %v404_v61 = vsel %vm392_vm3, %v2026_v35, 0.0  ;;  %v405_v63 = vsel %vm393_vm4, %v2026_v35, 0.0  ;;  %vm421_vm6 = vcmp.eq.s32.totalorder %v253_v39, 20 }
  0x77   : > { %v432_v0 = vsel %vm420_vm5, %v2033_v40, 0.0  ;;  %v433_v1 = vsel %vm421_vm6, %v2033_v40, 0.0  ;;  %vm448_vm7 = vcmp.eq.s32.totalorder %v252_v37, 21  ;;  %vm449_vm8 = vcmp.eq.s32.totalorder %v253_v39, 21 }
  0x78   : > { %v272_v2 = vsel %vm260_vm9, %v2058_v60, 0.0  ;;  %v273_v3 = vsel %vm261_vm10, %v2058_v60, 0.0  ;;  %v460_v32 = vsel %vm448_vm7, %v2036_v43, 0.0  ;;  %v461_v4 = vsel %vm449_vm8, %v2036_v43, 0.0 }
  0x79   : > { %v300_v5 = vadd.f32 %v292_v23, %v272_v2  ;;  %v301_v6 = vadd.f32 %v293_v33, %v273_v3  ;;  %vm262_vm11 = vcmp.eq.s32.totalorder %v2040_v44, 0  ;;  %vm263_vm12 = vcmp.eq.s32.totalorder %v2044_v45, 0 }
  0x7a   : > { %v274_v7 = vsel %vm262_vm11, %v2058_v60, 0.0  ;;  %v275_v8 = vsel %vm263_vm12, %v2058_v60, 0.0  ;;  %vm282_vm13 = vcmp.eq.s32.totalorder %v2040_v44, 1  ;;  %vm283_vm9 = vcmp.eq.s32.totalorder %v2044_v45, 1 }
  0x7b   : > { %v328_v9 = vadd.f32 %v320_v50, %v300_v5  ;;  %v329_v10 = vadd.f32 %v321_v38, %v301_v6  ;;  %v294_v11 = vsel %vm282_vm13, %v2014_v29, 0.0  ;;  %v295_v12 = vsel %vm283_vm9, %v2014_v29, 0.0 }
  0x7c   : > { %v302_v13 = vadd.f32 %v294_v11, %v274_v7  ;;  %v303_v14 = vadd.f32 %v295_v12, %v275_v8  ;;  %vm310_vm10 = vcmp.eq.s32.totalorder %v2040_v44, 4  ;;  %vm311_vm14 = vcmp.eq.s32.totalorder %v2044_v45, 4 }
  0x7d   : > { %v356_v15 = vadd.f32 %v348_v51, %v328_v9  ;;  %v357_v19 = vadd.f32 %v349_v55, %v329_v10  ;;  %v322_v20 = vsel %vm310_vm10, %v2017_v30, 0.0  ;;  %v323_v21 = vsel %vm311_vm14, %v2017_v30, 0.0 }
  0x7e   : > { %v330_v26 = vadd.f32 %v322_v20, %v302_v13  ;;  %v331_v27 = vadd.f32 %v323_v21, %v303_v14  ;;  %vm338_vm15 = vcmp.eq.s32.totalorder %v2040_v44, 5  ;;  %vm339_vm0 = vcmp.eq.s32.totalorder %v2044_v45, 5 }
  0x7f   : > { %v384_v36 = vadd.f32 %v376_v56, %v356_v15  ;;  %v385_v37 = vadd.f32 %v377_v59, %v357_v19  ;;  %v350_v39 = vsel %vm338_vm15, %v2020_v31, 0.0  ;;  %v351_v17 = vsel %vm339_vm0, %v2020_v31, 0.0 }
  0x80   : > { %v358_v23 = vadd.f32 %v350_v39, %v330_v26  ;;  %v359_v48 = vadd.f32 %v351_v17, %v331_v27  ;;  %vm366_vm1 = vcmp.eq.s32.totalorder %v2040_v44, 16  ;;  %vm367_vm2 = vcmp.eq.s32.totalorder %v2044_v45, 16 }
  0x81   : > { %v412_v33 = vadd.f32 %v404_v61, %v384_v36  ;;  %v413_v50 = vadd.f32 %v405_v63, %v385_v37  ;;  %v378_v38 = vsel %vm366_vm1, %v2023_v34, 0.0  ;;  %v379_v49 = vsel %vm367_vm2, %v2023_v34, 0.0 }
  0x82   : > { %v386_v51 = vadd.f32 %v378_v38, %v358_v23  ;;  %v387_v55 = vadd.f32 %v379_v49, %v359_v48  ;;  %vm394_vm3 = vcmp.eq.s32.totalorder %v2040_v44, 17  ;;  %vm395_vm4 = vcmp.eq.s32.totalorder %v2044_v45, 17 }
  0x83   : > { %v440_v56 = vadd.f32 %v432_v0, %v412_v33  ;;  %v441_v59 = vadd.f32 %v433_v1, %v413_v50  ;;  %v406_v2 = vsel %vm394_vm3, %v2026_v35, 0.0  ;;  %v407_v3 = vsel %vm395_vm4, %v2026_v35, 0.0 }
  0x84   : > { %v414_v5 = vadd.f32 %v406_v2, %v386_v51  ;;  %v415_v6 = vadd.f32 %v407_v3, %v387_v55  ;;  %vm422_vm5 = vcmp.eq.s32.totalorder %v2040_v44, 20  ;;  %vm423_vm6 = vcmp.eq.s32.totalorder %v2044_v45, 20 }
  0x85   : > { %v2096_v61 = vadd.f32 %v460_v32, %v440_v56  ;;  %v2098_v63 = vadd.f32 %v461_v4, %v441_v59  ;;  %v434_v7 = vsel %vm422_vm5, %v2033_v40, 0.0  ;;  %v435_v8 = vsel %vm423_vm6, %v2033_v40, 0.0 }
  0x86   : > { %v442_v0 = vadd.f32 %v434_v7, %v414_v5  ;;  %v443_v1 = vadd.f32 %v435_v8, %v415_v6  ;;  %vm450_vm7 = vcmp.eq.s32.totalorder %v2040_v44, 21  ;;  %vm451_vm8 = vcmp.eq.s32.totalorder %v2044_v45, 21 }
  0x87   : > { %v494_v9 = vand.u32 4294901760, %v2096_v61  ;;  %v497_v10 = vand.u32 4294901760, %v2098_v63  ;;  %v462_v11 = vsel %vm450_vm7, %v2036_v43, 0.0  ;;  %v463_v32 = vsel %vm451_vm8, %v2036_v43, 0.0 }
  0x88   : > { %v2108_v4 = vadd.f32 %v462_v11, %v442_v0  ;;  %v2110_v12 = vadd.f32 %v463_v32, %v443_v1  ;;  %v257_v13 = vsub.s32 %v1993_v52, %v2011_v28  ;;  %vm264_vm11 = vcmp.eq.s32.totalorder %v2047_v47, 0 }
  0x89   : > { %v2119_v44 = vpack.c.bf16 %v497_v10, %v494_v9  ;;  %v276_v45 = vsel %vm264_vm11, %v2058_v60, 0.0  ;;  %vm284_vm12 = vcmp.eq.s32.totalorder %v2047_v47, 1  ;;  %vm312_vm13 = vcmp.eq.s32.totalorder %v2047_v47, 4 }
  0x8a   : > { %v500_v14 = vand.u32 4294901760, %v2108_v4  ;;  %v503_v15 = vand.u32 4294901760, %v2110_v12  ;;  %vm265_vm9 = vcmp.eq.s32.totalorder %v257_v13, 0  ;;  %vm285_vm10 = vcmp.eq.s32.totalorder %v257_v13, 1 }
  0x8b   : > { %1481 = vmatprep.subr.bf16.mxu1 %v2119_v44  ;;  %1529 = vmatprep.subr.bf16.mxu0 %v2119_v44  ;;  %v277_v52 = vsel %vm265_vm9, %v2058_v60, 0.0  ;;  %v296_v19 = vsel %vm284_vm12, %v2014_v29, 0.0  ;;  %v297_v20 = vsel %vm285_vm10, %v2014_v29, 0.0  ;;  %vm313_vm14 = vcmp.eq.s32.totalorder %v257_v13, 4 }
  0x8c   : > { %1483 = vmatpush3.bf16.msra.mxu1 %v2119_v44  ;;  %1531 = vmatpush3.bf16.msra.mxu0 %v2119_v44  ;;  %v2137_v21 = vpack.c.bf16 %v503_v15, %v500_v14  ;;  %v304_v26 = vadd.f32 %v296_v19, %v276_v45  ;;  %v305_v27 = vadd.f32 %v297_v20, %v277_v52  ;;  %v324_v36 = vsel %vm312_vm13, %v2017_v30, 0.0 }
  0x8d   : > { %v325_v37 = vsel %vm313_vm14, %v2017_v30, 0.0  ;;  %vm340_vm15 = vcmp.eq.s32.totalorder %v2047_v47, 5  ;;  %vm341_vm0 = vcmp.eq.s32.totalorder %v257_v13, 5  ;;  %vm368_vm1 = vcmp.eq.s32.totalorder %v2047_v47, 16 }
  0x8e   : > { %1485 = vmatprep.subr.bf16.mxu1 %v2137_v21  ;;  %1533 = vmatprep.subr.bf16.mxu0 %v2137_v21  ;;  %v332_v39 = vadd.f32 %v324_v36, %v304_v26  ;;  %v333_v17 = vadd.f32 %v325_v37, %v305_v27  ;;  %v352_v23 = vsel %vm340_vm15, %v2020_v31, 0.0  ;;  %v353_v48 = vsel %vm341_vm0, %v2020_v31, 0.0 }
  0x8f   : > { %vm369_vm2 = vcmp.eq.s32.totalorder %v257_v13, 16  ;;  %v380_v33 = vsel %vm368_vm1, %v2023_v34, 0.0  ;;  %vm396_vm3 = vcmp.eq.s32.totalorder %v2047_v47, 17  ;;  %vm397_vm4 = vcmp.eq.s32.totalorder %v257_v13, 17 }
  0x90   : > { %1487 = vmatpush3.bf16.msra.mxu1 %v2137_v21  ;;  %1535 = vmatpush3.bf16.msra.mxu0 %v2137_v21  ;;  %v360_v50 = vadd.f32 %v352_v23, %v332_v39  ;;  %v361_v38 = vadd.f32 %v353_v48, %v333_v17  ;;  %v381_v49 = vsel %vm369_vm2, %v2023_v34, 0.0  ;;  %v408_v51 = vsel %vm396_vm3, %v2026_v35, 0.0 }
  0x91   : > { %v409_v55 = vsel %vm397_vm4, %v2026_v35, 0.0  ;;  %vm424_vm5 = vcmp.eq.s32.totalorder %v2047_v47, 20  ;;  %vm425_vm6 = vcmp.eq.s32.totalorder %v257_v13, 20  ;;  %vm452_vm7 = vcmp.eq.s32.totalorder %v2047_v47, 21 }
  0x92   : > { %v388_v56 = vadd.f32 %v380_v33, %v360_v50  ;;  %v389_v59 = vadd.f32 %v381_v49, %v361_v38  ;;  %v436_v2 = vsel %vm424_vm5, %v2033_v40, 0.0  ;;  %v437_v3 = vsel %vm425_vm6, %v2033_v40, 0.0 }
  0x93   : > { %vm453_vm8 = vcmp.eq.s32.totalorder %v257_v13, 21  ;;  %v464_v5 = vsel %vm452_vm7, %v2036_v43, 0.0  ;;  %v258_v6 = vsub.s32 %v1996_v53, %v2011_v28  ;;  %v259_v7 = vsub.s32 %v1999_v54, %v2011_v28 }
  0x94   : > { %v416_v8 = vadd.f32 %v408_v51, %v388_v56  ;;  %v417_v0 = vadd.f32 %v409_v55, %v389_v59  ;;  %v465_v1 = vsel %vm453_vm8, %v2036_v43, 0.0  ;;  %v2169_v47 = vsub.f32 %v2096_v61, %v494_v9 }
  0x95   : > { %vm266_vm11 = vcmp.eq.s32.totalorder %v258_v6, 0  ;;  %vm267_vm12 = vcmp.eq.s32.totalorder %v259_v7, 0  ;;  %vm286_vm13 = vcmp.eq.s32.totalorder %v258_v6, 1  ;;  %vm287_vm9 = vcmp.eq.s32.totalorder %v259_v7, 1 }
  0x96   : > { %v444_v11 = vadd.f32 %v436_v2, %v416_v8  ;;  %v445_v32 = vadd.f32 %v437_v3, %v417_v0  ;;  %v278_v53 = vsel %vm266_vm11, %v2058_v60, 0.0  ;;  %v279_v13 = vsel %vm267_vm12, %v2058_v60, 0.0 }
  0x97   : > { %v298_v54 = vsel %vm286_vm13, %v2014_v29, 0.0  ;;  %v299_v28 = vsel %vm287_vm9, %v2014_v29, 0.0  ;;  %vm314_vm10 = vcmp.eq.s32.totalorder %v258_v6, 4  ;;  %vm315_vm14 = vcmp.eq.s32.totalorder %v259_v7, 4 }
  0x98   : > { %v472_v45 = vadd.f32 %v464_v5, %v444_v11  ;;  %v473_v52 = vadd.f32 %v465_v1, %v445_v32  ;;  %v306_v61 = vadd.f32 %v298_v54, %v278_v53  ;;  %v307_v9 = vadd.f32 %v299_v28, %v279_v13 }
  0x99   : > { %v326_v19 = vsel %vm314_vm10, %v2017_v30, 0.0  ;;  %v327_v20 = vsel %vm315_vm14, %v2017_v30, 0.0  ;;  %vm342_vm15 = vcmp.eq.s32.totalorder %v258_v6, 5  ;;  %vm343_vm0 = vcmp.eq.s32.totalorder %v259_v7, 5 }
  0x9a   : > { %v506_v26 = vand.u32 4294901760, %v472_v45  ;;  %v509_v27 = vand.u32 4294901760, %v473_v52  ;;  %v334_v36 = vadd.f32 %v326_v19, %v306_v61  ;;  %v335_v60 = vadd.f32 %v327_v20, %v307_v9 }
  0x9b   : > { %v354_v37 = vsel %vm342_vm15, %v2020_v31, 0.0  ;;  %v355_v29 = vsel %vm343_vm0, %v2020_v31, 0.0  ;;  %vm370_vm1 = vcmp.eq.s32.totalorder %v258_v6, 16  ;;  %vm371_vm2 = vcmp.eq.s32.totalorder %v259_v7, 16 }
  0x9c   : > { %v2179_v39 = vpack.c.bf16 %v509_v27, %v506_v26  ;;  %v362_v17 = vadd.f32 %v354_v37, %v334_v36  ;;  %v363_v23 = vadd.f32 %v355_v29, %v335_v60  ;;  %v382_v48 = vsel %vm370_vm1, %v2023_v34, 0.0 }
  0x9d   : > { %v383_v30 = vsel %vm371_vm2, %v2023_v34, 0.0  ;;  %vm398_vm3 = vcmp.eq.s32.totalorder %v258_v6, 17  ;;  %vm399_vm4 = vcmp.eq.s32.totalorder %v259_v7, 17  ;;  %vm426_vm5 = vcmp.eq.s32.totalorder %v258_v6, 20 }
  0x9e   : > { %1489 = vmatprep.subr.bf16.mxu1 %v2179_v39  ;;  %1537 = vmatprep.subr.bf16.mxu0 %v2179_v39  ;;  %v390_v33 = vadd.f32 %v382_v48, %v362_v17  ;;  %v391_v50 = vadd.f32 %v383_v30, %v363_v23  ;;  %v410_v31 = vsel %vm398_vm3, %v2026_v35, 0.0  ;;  %v411_v38 = vsel %vm399_vm4, %v2026_v35, 0.0 }
  0x9f   : > { %1491 = vmatpush3.bf16.msra.mxu1 %v2179_v39  ;;  %1539 = vmatpush3.bf16.msra.mxu0 %v2179_v39  ;;  %vm427_vm6 = vcmp.eq.s32.totalorder %v259_v7, 20  ;;  %v438_v34 = vsel %vm426_vm5, %v2033_v40, 0.0  ;;  %vm454_vm7 = vcmp.eq.s32.totalorder %v258_v6, 21  ;;  %vm455_vm8 = vcmp.eq.s32.totalorder %v259_v7, 21 }
  0xa0   : > { %v418_v49 = vadd.f32 %v410_v31, %v390_v33  ;;  %v419_v51 = vadd.f32 %v411_v38, %v391_v50  ;;  %v439_v55 = vsel %vm427_vm6, %v2033_v40, 0.0  ;;  %v466_v56 = vsel %vm454_vm7, %v2036_v43, 0.0 }
  0xa1   : > { %v467_v59 = vsel %vm455_vm8, %v2036_v43, 0.0  ;;  %v609_v2 = vand.u32 4294901760, %v2169_v47  ;;  %v2197_v35 = vsub.f32 %v2098_v63, %v497_v10  ;;  %v2202_v3 = vsub.f32 %v2108_v4, %v500_v14 }
  0xa2   : > { %v446_v5 = vadd.f32 %v438_v34, %v418_v49  ;;  %v447_v6 = vadd.f32 %v439_v55, %v419_v51  ;;  %v2207_v40 = vsub.f32 %v2110_v12, %v503_v15  ;;  %v2209_v43 = vsub.f32 %v472_v45, %v506_v26 }
  0xa3   : > { %v610_v7 = vsub.f32 %v2169_v47, %v609_v2  ;;  %v616_v8 = vand.u32 4294901760, %v2197_v35  ;;  %v623_v63 = vand.u32 4294901760, %v2202_v3  ;;  %v2214_v10 = vsub.f32 %v473_v52, %v509_v27 }
  0xa4   : > { %v474_v0 = vadd.f32 %v466_v56, %v446_v5  ;;  %v475_v4 = vadd.f32 %v467_v59, %v447_v6  ;;  %v630_v14 = vand.u32 4294901760, %v2207_v40  ;;  %v637_v1 = vand.u32 4294901760, %v2209_v43 }
  0xa5   : > { %v611_v11 = vand.u32 4294901760, %v610_v7  ;;  %v617_v12 = vsub.f32 %v2197_v35, %v616_v8  ;;  %v624_v15 = vsub.f32 %v2202_v3, %v623_v63  ;;  %v2222_v32 = vsub.f32 %v1988_v42, %v2003_v58 }
  0xa6   : > { %v512_v53 = vand.u32 4294901760, %v474_v0  ;;  %v515_v13 = vand.u32 4294901760, %v475_v4  ;;  %v1544_v54 = vpack.c.bf16 %v616_v8, %v609_v2  ;;  %v631_v28 = vsub.f32 %v2207_v40, %v630_v14 }
  0xa7   : > { %v618_v45 = vand.u32 4294901760, %v617_v12  ;;  %v625_v52 = vand.u32 4294901760, %v624_v15  ;;  %v638_v61 = vsub.f32 %v2209_v43, %v637_v1  ;;  %v644_v9 = vand.u32 4294901760, %v2214_v10 }
  0xa8   : > { %v2227_v19 = vpack.c.bf16 %v515_v13, %v512_v53  ;;  %v632_v20 = vand.u32 4294901760, %v631_v28  ;;  %v2229_v26 = vsub.f32 %v474_v0, %v512_v53  ;;  %v2231_v27 = vsub.f32 %v475_v4, %v515_v13 }
  0xa9   : > { %v1496_v42 = vpack.c.bf16 %v618_v45, %v611_v11  ;;  %v645_v36 = vsub.f32 %v2214_v10, %v644_v9  ;;  %v589_v60 = vsub.f32 %v1985_v41, %v588_v57  ;;  %v580_v37 = vand.u32 4294901760, %v2008_v62 }
  0xaa   : > { %1493 = vmatprep.subr.bf16.mxu1 %v2227_v19  ;;  %1541 = vmatprep.subr.bf16.mxu0 %v2227_v19  ;;  %v651_v29 = vand.u32 4294901760, %v2229_v26  ;;  %v658_v17 = vand.u32 4294901760, %v2231_v27  ;;  %v598_v23 = vand.u32 4294901760, %v2222_v32  ;;  %v1548_v48 = vpack.c.bf16 %v630_v14, %v623_v63 }
  0xab   : > { %1495 = vmatpush3.bf16.msra.mxu1 %v2227_v19  ;;  %1543 = vmatpush3.bf16.msra.mxu0 %v2227_v19  ;;  %v639_v30 = vand.u32 4294901760, %v638_v61  ;;  %v1500_v33 = vpack.c.bf16 %v632_v20, %v625_v52  ;;  %v646_v50 = vand.u32 4294901760, %v645_v36  ;;  %v590_v38 = vand.u32 4294901760, %v589_v60 }
  0xac   : > { %1497 = vmatprep.subr.bf16.mxu1 %v1496_v42  ;;  %1545 = vmatprep.subr.bf16.mxu0 %v1544_v54  ;;  %v652_v31 = vsub.f32 %v2229_v26, %v651_v29  ;;  %v659_v62 = vsub.f32 %v2231_v27, %v658_v17  ;;  %v599_v34 = vsub.f32 %v2222_v32, %v598_v23 }
  0xad   : > { %v1504_v51 = vpack.c.bf16 %v646_v50, %v639_v30  ;;  %v1552_v55 = vpack.c.bf16 %v644_v9, %v637_v1  ;;  %v1556_v2 = vpack.c.bf16 %v658_v17, %v651_v29  ;;  %v1512_v5 = vpack.c.bf16 %v2197_v35, %v2169_v47 }
  0xae   : > { %1365 = vmatmul.mubr.f32.vlgmr.msra.gmra.mrb[0].mxu1 %v580_v37  ;;  %1431 = vmatmul.mubr.f32.vlgmr.msra.gmra.mrb[0].mxu0 %v578_v46  ;;  %v600_v49 = vand.u32 4294901760, %v599_v34  ;;  %v653_v56 = vand.u32 4294901760, %v652_v31  ;;  %v660_v59 = vand.u32 4294901760, %v659_v62  ;;  %v1520_v47 = vpack.c.bf16 %v2214_v10, %v2209_v43 }
  0xaf   : > { %1499 = vmatpush3.bf16.msra.mxu1 %v1496_v42  ;;  %1547 = vmatpush3.bf16.msra.mxu0 %v1544_v54 }
  0xb0   : > { %1501 = vmatprep.subr.bf16.mxu1 %v1500_v33  ;;  %1549 = vmatprep.subr.bf16.mxu0 %v1548_v48  ;;  %v1508_v46 = vpack.c.bf16 %v660_v59, %v653_v56 }
  0xb1   : > { %1367 = vmatprep.mubr.f32.mxu1 %v590_v38  ;;  %1433 = vmatprep.mubr.f32.mxu0 %v588_v57  ;;  %v1516_v57 = vpack.c.bf16 %v2207_v40, %v2202_v3 }
  0xb2   : > { %1368 = vmatmul.mubr.f32.gmra.mrb[2].mxu1 %v600_v49  ;;  %1434 = vmatmul.mubr.f32.gmra.mrb[2].mxu0 %v598_v23 }
  0xb3   : > { %1503 = vmatpush3.bf16.msra.mxu1 %v1500_v33  ;;  %1551 = vmatpush3.bf16.msra.mxu0 %v1548_v48 }
  0xb4   : > { %1505 = vmatprep.subr.bf16.mxu1 %v1504_v51  ;;  %1553 = vmatprep.subr.bf16.mxu0 %v1552_v55 }
  0xb5   : > { %1386 = vmatprep.mubr.f32.mxu1 %v1956_v16  ;;  %1452 = vmatprep.mubr.f32.mxu0 %v1956_v16 }
  0xb7   : > { %1507 = vmatpush3.bf16.msra.mxu1 %v1504_v51  ;;  %1555 = vmatpush3.bf16.msra.mxu0 %v1552_v55 }
  0xb8   : > { %1509 = vmatprep.subr.bf16.mxu1 %v1508_v46  ;;  %1557 = vmatprep.subr.bf16.mxu0 %v1556_v2 }
  0xbb   : > { %1511 = vmatpush3.bf16.msra.mxu1 %v1508_v46  ;;  %1559 = vmatpush3.bf16.msra.mxu0 %v1556_v2 }
  0xbc   : > { %1513 = vmatprep.subr.bf16.mxu1 %v1512_v5  ;;  %1561 = vmatprep.subr.bf16.mxu0 %v2119_v44 }
  0xbe   : > { %1387 = vmatmul.mubr.f32.vlgmr.msra.gmra.mrb[0].mxu1 %v1960_v18  ;;  %1453 = vmatmul.mubr.f32.vlgmr.msra.gmra.mrb[0].mxu0 %v1960_v18 }
  0xbf   : > { %1515 = vmatpush3.bf16.msra.mxu1 %v1512_v5  ;;  %1563 = vmatpush3.bf16.msra.mxu0 %v2119_v44  ;;  %v1524_v44 = vpack.c.bf16 %v2231_v27, %v2229_v26 }
  0xc0   : > { %1517 = vmatprep.subr.bf16.mxu1 %v1516_v57  ;;  %1565 = vmatprep.subr.bf16.mxu0 %v2137_v21 }
  0xc1   : > { %1389 = vmatprep.mubr.f32.mxu1 %v1971_v25  ;;  %1455 = vmatprep.mubr.f32.mxu0 %v1971_v25 }
  0xc2   : > { %1390 = vmatmul.mubr.f32.gmra.mrb[2].mxu1 %v2003_v58  ;;  %1456 = vmatmul.mubr.f32.gmra.mrb[2].mxu0 %v2003_v58 }
  0xc3   : > { %1519 = vmatpush3.bf16.msra.mxu1 %v1516_v57  ;;  %1567 = vmatpush3.bf16.msra.mxu0 %v2137_v21 }
  0xc4   : > { %1521 = vmatprep.subr.bf16.mxu1 %v1520_v47  ;;  %1569 = vmatprep.subr.bf16.mxu0 %v2179_v39 }
  0xc5   : > { %1408 = vmatprep.mubr.f32.mxu1 %v1963_v22  ;;  %1474 = vmatprep.mubr.f32.mxu0 %v1956_v16 }
  0xc7   : > { %1523 = vmatpush3.bf16.msra.mxu1 %v1520_v47  ;;  %1571 = vmatpush3.bf16.msra.mxu0 %v2179_v39 }
  0xc8   : > { %1525 = vmatprep.subr.bf16.mxu1 %v1524_v44  ;;  %1573 = vmatprep.subr.bf16.mxu0 %v2227_v19 }
  0xcb   : > { %1527 = vmatpush3.bf16.msra.mxu1 %v1524_v44  ;;  %1575 = vmatpush3.bf16.msra.mxu0 %v2227_v19 }
  0xce   : > { %1409 = vmatmul.mubr.f32.vlgmr.msra.gmra.mrb[0].mxu1 %v1969_v24  ;;  %1475 = vmatmul.mubr.f32.vlgmr.msra.gmra.mrb[0].mxu0 %v1960_v18 }
  0xcf   : > { %1411 = vmatprep.mubr.f32.mxu1 %v1985_v41  ;;  %1477 = vmatprep.mubr.f32.mxu0 %v1971_v25 }
  0xd2   : > { %1412 = vmatmul.mubr.f32.gmra.mrb[2].mxu1 %v2222_v32  ;;  %1478 = vmatmul.mubr.f32.gmra.mrb[2].mxu0 %v2003_v58 }
 0x1a1   : > { %v1410_v16 = vpop.f32.mrb[0].mxu1  ;;  %v1476_v22 = vpop.f32.mrb[0].mxu0 }
 0x1a2   : > { %v1576_v21 = vadd.f32 %v1476_v22, %v1410_v16  ;;  %v819_v39 = vpop.f32.mrb[1].mxu1  ;;  %v1137_v35 = vpop.f32.mrb[1].mxu0 }
 0x1a3   : > { %v1577_v24 = vadd.f32 %v1137_v35, %v819_v39 }
 0x1a4   : > { %1160 = vst [vmem:[%s173_s17 + $0x8] sm:$0xff] %v1576_v21 }
 0x1a5   : > { %1159 = vst [vmem:[%s173_s17] sm:$0xff] %v1577_v24  ;;  %v1413_v18 = vpop.f32.mrb[2].mxu1  ;;  %v1479_v25 = vpop.f32.mrb[2].mxu0 }
 0x1a6   : > { %v1578_v41 = vadd.f32 %v1479_v25, %v1413_v18  ;;  %v833_v58 = vpop.f32.mrb[3].mxu1  ;;  %v1149_v3 = vpop.f32.mrb[3].mxu0 }
 0x1a7   : > { %v1579_v6 = vadd.f32 %v1149_v3, %v833_v58 }
 0x1a8   : > { %1162 = vst [vmem:[%s173_s17 + $0x18] sm:$0xff] %v1578_v41 }
 0x1a9   : > { %1161 = vst [vmem:[%s173_s17 + $0x10] sm:$0xff] %v1579_v6 }
 0x1aa   : > { %1731 = shalt.err (!%p1728_p7)
}
 0x1ab   : > { %s1732_s7 = scalar_lea.hbm %s2291_s30, 512  ;;  %s1736_s25 = scalar_lea.hbm %s2336_s2, 4096 }
 0x1ac   : > { %p1733_p9 = scmp.ne.s32.totalorder %s2291_s30, %s1732_s7  ;;  %p1737_p0 = scmp.lt.u32.totalorder %s2291_s30, %s2336_s2 }
 0x1ad   : > { %p1738_p2 = scmp.lt.u32.totalorder %s1736_s25, %s1732_s7  ;;  %p1740_p1 = scmp.lt.u32.totalorder %s1732_s7, %s2291_s30 }
 0x1ae   : > { %p1734_p11 = pnand %p1733_p9, %p1896_p12 }
 0x1af   : > { %p1739_p10 = por %p1738_p2, %p1737_p0 }
 0x1b0   : > { %p1735_p5 = pneg %p1734_p11 }
 0x1b1   : > { %p1741_p4 = por %p1740_p1, %p1739_p10 }
 0x1b3   : > { %p1742_p6 = pnand %p1741_p4, %p1735_p5 }
 0x1b5   : > { %1745 = shalt.err (!%p1742_p6)
}
 0x1b6   : > { %s1795_s29 = smov 128   ;;  %s1796_s15 = smov 1024  }
 0x1b7   : > { %s1797_s17 = smov 8  }
 0x1b8   : > { %1604 = dma.vmem_to_hbm [thread:$0]  (%p1896_p12), %s2286_s27, 512, %s2291_s30, %s1164_s13, %s1795_s29, %s1796_s15, %s1797_s17  }
 0x1b9 PF: > { %p1621_p8 = scmp.ge.s32.totalorder %s1788_s12, 2  ;;  %s1191_s22 = sand.u32 1, %s1776_s9  }
 0x1ba   : > { %p2351_p13 = scmp.ne.s32.totalorder %s2341_s16, 0  ;;  %s1192_s23 = scalar_lea.sflag [#allocation4], %s1191_s22 }
 0x1bc   : > { %p1615_p3 = pnand %p1621_p8, %p2351_p13 }
 0x1be   : > { %1771 = dma.done.wait (!%p1615_p3), %s1192_s23, 512  }
 0x1bf   : > { %1773 = vsyncadd (!%p1615_p3), %s1192_s23, 4294966784  ;;  %p16_p7 = scmp.ge.s32.totalorder %s1866_s21, 10   ;;  %s2352_s9 = smov %s1780_s10 }
 0x1c0   : > { %s2353_s10 = smov %s1784_s11  ;;  %s2354_s11 = smov %s1892_s8 }
 0x1c1   : > { %s2355_s12 = smov %s1866_s21  ;;  %18 = sbr.rel (!%p16_p7) target bundleno = 6 (0x6), region = 77 }
 0x1c8   :  { %1197 = vsyncpa [#allocation3], 1 }
 0x1c9   :  { %1199 = vsyncpa [#allocation3 + $0x1], 1 }
 0x1ca   :  { %1200 = vsyncpa [#allocation6], 1 }
 0x1cb   :  { %1201 = vsyncpa [#allocation4], 1 }
 0x1cc   :  { %1203 = vsyncpa [#allocation4 + $0x1], 1 }

</bundles_post_ra>
